<compile_context>
chip_gen: v5e
topology: v5e:2x2
jax: 0.10.0
libtpu: 0.0.40
codegen_flags: <defaults>
</compile_context>

<pallas_src>
import functools

import jax
import jax.numpy as jnp
from jax import lax
from jax.experimental import pallas as pl
from jax.experimental.pallas import tpu as pltpu


_LN_EPS = 1e-5  # torch.nn.LayerNorm default


def _smt_kernel(s_ref, w1_ref, w2_ref, w3_ref, vec_ref, o_ref, *, precision):
    """One row-tile of the fused transition: 3x linear + relu + residual + LN.

    vec_ref is an (8, C) f32 block: rows 0..4 = b1, b2, b3, gamma, beta.
    """
    x = s_ref[...]                      # native dtype -> MXU consumes directly
    w_dtype = w1_ref.dtype

    b1 = vec_ref[0:1, :]
    b2 = vec_ref[1:2, :]
    b3 = vec_ref[2:3, :]
    gamma = vec_ref[3:4, :]
    beta = vec_ref[4:5, :]

    # linear_1 + relu  (f32 accumulation via preferred_element_type)
    h = jnp.dot(x, w1_ref[...],
                preferred_element_type=jnp.float32, precision=precision)
    h = jnp.maximum(h + b1, 0.0)

    # linear_2 + relu  (downcast to native dtype so the MXU stays in bf16 mode
    # when the params are bf16; no-op for f32 params)
    h = jnp.dot(h.astype(w_dtype), w2_ref[...],
                preferred_element_type=jnp.float32, precision=precision)
    h = jnp.maximum(h + b2, 0.0)

    # linear_3
    h = jnp.dot(h.astype(w_dtype), w3_ref[...],
                preferred_element_type=jnp.float32, precision=precision)
    h = h + b3

    # Residual (re-read the resident VMEM input tile) + LayerNorm (f32).
    y = h + s_ref[...].astype(jnp.float32)
    mean = jnp.mean(y, axis=-1, keepdims=True)
    yc = y - mean
    var = jnp.mean(yc * yc, axis=-1, keepdims=True)
    inv = lax.rsqrt(var + _LN_EPS)
    o_ref[...] = (yc * inv * gamma + beta).astype(o_ref.dtype)


def _round_up(x, m):
    return ((x + m - 1) // m) * m


def _pick_tile_m(m, dtype):
    """Row tile targeting ~8 grid steps, capped at 512 rows.

    512-row tiles already hit ~85% of HBM roofline; >=8 steps gives the
    BlockSpec double-buffer a steady state and each v7x TensorCore multiple
    iterations on the 'parallel' grid axis.
    """
    itemsize = jnp.dtype(dtype).itemsize
    mult = 8 if itemsize >= 4 else (16 if itemsize == 2 else 32)
    tile = _round_up(max(1, pl.cdiv(m, 8)), mult)
    return max(mult, min(tile, 512))


@functools.partial(jax.jit, static_argnames=("tile_m", "precision"))
def structure_module_transition(s, w1, b1, w2, b2, w3, b3, gamma, beta,
                                *, tile_m=None, precision=None):
    """Pallas implementation of StructureModuleTransition.forward.

    Args:
      s:           [*, N_res, C] single representation.
      w1, w2, w3:  [C, C] linear weights in PyTorch layout (out_dim, in_dim).
      b1, b2, b3:  [C] biases.
      gamma, beta: [C] LayerNorm affine params.
      tile_m:      optional row-tile override.
      precision:   optional lax.Precision for the three dots
                   (None = default MXU precision; HIGHEST = fp32 parity).
    Returns:
      [*, N_res, C] transformed representation (same dtype as s).
    """
    *lead, c = s.shape
    m = 1
    for d in lead:
        m *= d
    s2d = s.reshape(m, c)

    if tile_m is None:
        tile_m = _pick_tile_m(m, s.dtype)
    grid = (pl.cdiv(m, tile_m),)

    # Pre-transpose weights so the hot path is row_tile @ [C_in, C_out].
    w1T, w2T, w3T = w1.T, w2.T, w3.T

    # Pack b1, b2, b3, gamma, beta into one (8, C) f32 block (sublane-padded):
    # one DMA window instead of five (1, C) windows.
    vec = jnp.concatenate(
        [jnp.stack([b1, b2, b3, gamma, beta]).astype(jnp.float32),
         jnp.zeros((3, c), jnp.float32)],
        axis=0,
    )

    s_itemsize = jnp.dtype(s.dtype).itemsize
    w_itemsize = jnp.dtype(w1.dtype).itemsize
    cost = pl.CostEstimate(
        flops=6 * m * c * c,                 # 3 matmuls, 2*M*C*C each
        transcendentals=m,                   # one rsqrt per row
        bytes_accessed=2 * m * c * s_itemsize + 3 * c * c * w_itemsize,
    )

    row_spec = pl.BlockSpec((tile_m, c), lambda i: (i, 0))
    # Constant-index blocks: single-buffered (they never change across steps).
    w_spec = pl.BlockSpec((c, c), lambda i: (0, 0),
                          pipeline_mode=pl.Buffered(1))
    vec_spec = pl.BlockSpec((8, c), lambda i: (0, 0),
                            pipeline_mode=pl.Buffered(1))

    kernel = functools.partial(_smt_kernel, precision=precision)

    out2d = pl.pallas_call(
        kernel,
        out_shape=jax.ShapeDtypeStruct((m, c), s.dtype),
        grid_spec=pltpu.PrefetchScalarGridSpec(
            num_scalar_prefetch=0,
            grid=grid,
            in_specs=[
                row_spec,                  # s tile
                w_spec, w_spec, w_spec,    # W1^T, W2^T, W3^T
                vec_spec,                  # packed b1/b2/b3/gamma/beta
            ],
            out_specs=row_spec,
        ),
        compiler_params=pltpu.CompilerParams(
            dimension_semantics=("parallel",),
        ),
        cost_estimate=cost,
    )(s2d, w1T, w2T, w3T, vec)

    return out2d.reshape(*lead, c)


def init_smt_params(c, dtype=jnp.float32, zero_final=True, key=None):
    """Parameters matching StructureModuleTransition.__init__.

    linear_1 / linear_2 use init='relu' (He normal ~ N(0, 2/c) here),
    linear_3 uses init='final' (zeros), all linear biases are zero, and the
    LayerNorm is gamma=1, beta=0.  With zero_final=False, linear_3 also gets
    random weights so the full fused path is numerically exercised in tests.
    """
    assert key is not None
    k1, k2, k3, kb = jax.random.split(key, 4)
    scale = jnp.sqrt(jnp.asarray(2.0 / c, dtype))
    w1 = jax.random.normal(k1, (c, c), dtype) * scale
    w2 = jax.random.normal(k2, (c, c), dtype) * scale
    if zero_final:
        w3 = jnp.zeros((c, c), dtype)
        b3 = jnp.zeros((c,), dtype)
    else:
        w3 = jax.random.normal(k3, (c, c), dtype) * scale
        b3 = jax.random.normal(kb, (c,), dtype) * 0.1
    b1 = jnp.zeros((c,), dtype)
    b2 = jnp.zeros((c,), dtype)
    gamma = jnp.ones((c,), dtype)
    beta = jnp.zeros((c,), dtype)
    return w1, b1, w2, b2, w3, b3, gamma, beta


def _reference(s, w1, b1, w2, b2, w3, b3, gamma, beta):
    """Plain-JAX f32 reference for correctness checks."""
    x = s.astype(jnp.float32)
    h = jnp.maximum(x @ w1.T.astype(jnp.float32) + b1.astype(jnp.float32), 0.0)
    h = jnp.maximum(h @ w2.T.astype(jnp.float32) + b2.astype(jnp.float32), 0.0)
    h = h @ w3.T.astype(jnp.float32) + b3.astype(jnp.float32)
    y = h + x
    mean = y.mean(-1, keepdims=True)
    yc = y - mean
    var = (yc * yc).mean(-1, keepdims=True)
    out = yc * lax.rsqrt(var + _LN_EPS) * gamma.astype(jnp.float32) \
        + beta.astype(jnp.float32)
    return out.astype(s.dtype)


if __name__ == "__main__":
    key = jax.random.PRNGKey(0)
    k_s, k_p = jax.random.split(key)

    # Small shapes consistent with the module: [batch, N_res, C].
    # (C=32 is a toy channel count; production C=384 is lane-aligned.)
    batch, n_res, c = 2, 8, 32
    s = jax.random.normal(k_s, (batch, n_res, c), jnp.float32)

    # Non-zero params on all three linears to exercise the full fused path.
    params = init_smt_params(c, zero_final=False, key=k_p)
    out = jax.block_until_ready(structure_module_transition(s, *params))
    ref = _reference(s, *params)
    assert out.shape == (batch, n_res, c), out.shape
    # Tolerance accounts for MXU default-precision (bf16-pass) matmuls vs the
    # XLA reference's own default-precision matmuls.
    assert jnp.allclose(out, ref, atol=2e-2, rtol=2e-2), (
        float(jnp.max(jnp.abs(out - ref)))
    )

    # Faithful module init (linear_3 weight/bias = 0): the result path is
    # exactly LayerNorm(s), independent of matmul precision -> tight check.
    params0 = init_smt_params(c, zero_final=True, key=k_p)
    out0 = jax.block_until_ready(structure_module_transition(s, *params0))
    x32 = s.astype(jnp.float32)
    mu = x32.mean(-1, keepdims=True)
    xc = x32 - mu
    ln = xc * lax.rsqrt((xc * xc).mean(-1, keepdims=True) + _LN_EPS)
    assert jnp.allclose(out0, ln, atol=1e-5, rtol=1e-5), (
        float(jnp.max(jnp.abs(out0 - ln)))
    )

    # Non-tile-aligned row count (ragged tail block path).
    s_odd = jax.random.normal(k_s, (3, 7, c), jnp.float32)
    out_odd = jax.block_until_ready(structure_module_transition(s_odd, *params))
    assert jnp.allclose(out_odd, _reference(s_odd, *params),
                        atol=2e-2, rtol=2e-2)

    # bf16 path: native-dtype MXU operands, f32 accumulation / LayerNorm.
    s_bf = s.astype(jnp.bfloat16)
    params_bf = tuple(p.astype(jnp.bfloat16) for p in params)
    out_bf = jax.block_until_ready(structure_module_transition(s_bf, *params_bf))
    ref_bf = _reference(s_bf, *params_bf).astype(jnp.float32)
    assert jnp.allclose(out_bf.astype(jnp.float32), ref_bf, atol=1e-1, rtol=1e-1)

    print("KERNEL_OK")
</pallas_src>

<mosaic_0001>
module attributes {stable_mosaic.version = 11 : i64} {
  func.func @_smt_kernel(%arg0: i32, %arg1: memref<8x32xf32, #tpu.memory_space<vmem>>, %arg2: memref<32x32xf32, #tpu.memory_space<vmem>>, %arg3: memref<32x32xf32, #tpu.memory_space<vmem>>, %arg4: memref<32x32xf32, #tpu.memory_space<vmem>>, %arg5: memref<8x32xf32, #tpu.memory_space<vmem>>, %arg6: memref<8x32xf32, #tpu.memory_space<vmem>>) attributes {dimension_semantics = [#tpu.dimension_semantics<parallel>], iteration_bounds = array<i64: 2>, scalar_prefetch = 0 : i64, scratch_operands = 0 : i64, tpu.core_type = #tpu.core_type<tc>, window_params = [{transform_indices = @transform_0, window_bounds = array<i64: 8, 32>}, {pipeline_mode = #tpu.pipeline_mode<synchronous>, transform_indices = @transform_1, window_bounds = array<i64: 32, 32>}, {pipeline_mode = #tpu.pipeline_mode<synchronous>, transform_indices = @transform_2, window_bounds = array<i64: 32, 32>}, {pipeline_mode = #tpu.pipeline_mode<synchronous>, transform_indices = @transform_3, window_bounds = array<i64: 32, 32>}, {pipeline_mode = #tpu.pipeline_mode<synchronous>, transform_indices = @transform_4, window_bounds = array<i64: 8, 32>}, {transform_indices = @transform_5, window_bounds = array<i64: 8, 32>}]} {
    %c0 = arith.constant 0 : index
    %c0_0 = arith.constant 0 : index
    %0 = vector.load %arg1[%c0, %c0_0] : memref<8x32xf32, #tpu.memory_space<vmem>>, vector<8x32xf32>
    %c0_1 = arith.constant 0 : index
    %c0_2 = arith.constant 0 : index
    %1 = vector.load %arg5[%c0_1, %c0_2] : memref<8x32xf32, #tpu.memory_space<vmem>>, vector<1x32xf32>
    %c1 = arith.constant 1 : index
    %c0_3 = arith.constant 0 : index
    %2 = vector.load %arg5[%c1, %c0_3] : memref<8x32xf32, #tpu.memory_space<vmem>>, vector<1x32xf32>
    %c2 = arith.constant 2 : index
    %c0_4 = arith.constant 0 : index
    %3 = vector.load %arg5[%c2, %c0_4] : memref<8x32xf32, #tpu.memory_space<vmem>>, vector<1x32xf32>
    %c3 = arith.constant 3 : index
    %c0_5 = arith.constant 0 : index
    %4 = vector.load %arg5[%c3, %c0_5] : memref<8x32xf32, #tpu.memory_space<vmem>>, vector<1x32xf32>
    %c4 = arith.constant 4 : index
    %c0_6 = arith.constant 0 : index
    %5 = vector.load %arg5[%c4, %c0_6] : memref<8x32xf32, #tpu.memory_space<vmem>>, vector<1x32xf32>
    %c0_7 = arith.constant 0 : index
    %c0_8 = arith.constant 0 : index
    %6 = vector.load %arg2[%c0_7, %c0_8] : memref<32x32xf32, #tpu.memory_space<vmem>>, vector<32x32xf32>
    %cst = arith.constant dense<0.000000e+00> : vector<8x32xf32>
    %7 = tpu.matmul %0, %6, %cst {dimension_numbers = #tpu.dot_dimension_numbers<[1], [0], [0], [1], [0, 0, 1, 1], [], []>} : vector<8x32xf32>, vector<32x32xf32>, vector<8x32xf32> -> vector<8x32xf32>
    %8 = vector.broadcast %1 : vector<1x32xf32> to vector<8x32xf32>
    %9 = arith.addf %7, %8 : vector<8x32xf32>
    %cst_9 = arith.constant 0.000000e+00 : f32
    %10 = vector.broadcast %cst_9 : f32 to vector<8x32xf32>
    %11 = arith.maximumf %9, %10 : vector<8x32xf32>
    %c0_10 = arith.constant 0 : index
    %c0_11 = arith.constant 0 : index
    %12 = vector.load %arg3[%c0_10, %c0_11] : memref<32x32xf32, #tpu.memory_space<vmem>>, vector<32x32xf32>
    %cst_12 = arith.constant dense<0.000000e+00> : vector<8x32xf32>
    %13 = tpu.matmul %11, %12, %cst_12 {dimension_numbers = #tpu.dot_dimension_numbers<[1], [0], [0], [1], [0, 0, 1, 1], [], []>} : vector<8x32xf32>, vector<32x32xf32>, vector<8x32xf32> -> vector<8x32xf32>
    %14 = vector.broadcast %2 : vector<1x32xf32> to vector<8x32xf32>
    %15 = arith.addf %13, %14 : vector<8x32xf32>
    %cst_13 = arith.constant 0.000000e+00 : f32
    %16 = vector.broadcast %cst_13 : f32 to vector<8x32xf32>
    %17 = arith.maximumf %15, %16 : vector<8x32xf32>
    %c0_14 = arith.constant 0 : index
    %c0_15 = arith.constant 0 : index
    %18 = vector.load %arg4[%c0_14, %c0_15] : memref<32x32xf32, #tpu.memory_space<vmem>>, vector<32x32xf32>
    %cst_16 = arith.constant dense<0.000000e+00> : vector<8x32xf32>
    %19 = tpu.matmul %17, %18, %cst_16 {dimension_numbers = #tpu.dot_dimension_numbers<[1], [0], [0], [1], [0, 0, 1, 1], [], []>} : vector<8x32xf32>, vector<32x32xf32>, vector<8x32xf32> -> vector<8x32xf32>
    %20 = vector.broadcast %3 : vector<1x32xf32> to vector<8x32xf32>
    %21 = arith.addf %19, %20 : vector<8x32xf32>
    %c0_17 = arith.constant 0 : index
    %c0_18 = arith.constant 0 : index
    %22 = vector.load %arg1[%c0_17, %c0_18] : memref<8x32xf32, #tpu.memory_space<vmem>>, vector<8x32xf32>
    %23 = arith.addf %21, %22 : vector<8x32xf32>
    %cst_19 = arith.constant dense<0.000000e+00> : vector<8xf32>
    %24 = vector.multi_reduction <add>, %23, %cst_19 [1] : vector<8x32xf32> to vector<8xf32>
    %25 = vector.shape_cast %24 : vector<8xf32> to vector<8x1xf32>
    %cst_20 = arith.constant 3.200000e+01 : f32
    %26 = vector.broadcast %cst_20 : f32 to vector<8x1xf32>
    %27 = arith.divf %25, %26 : vector<8x1xf32>
    %28 = vector.broadcast %27 : vector<8x1xf32> to vector<8x32xf32>
    %29 = arith.subf %23, %28 : vector<8x32xf32>
    %30 = arith.mulf %29, %29 : vector<8x32xf32>
    %cst_21 = arith.constant dense<0.000000e+00> : vector<8xf32>
    %31 = vector.multi_reduction <add>, %30, %cst_21 [1] : vector<8x32xf32> to vector<8xf32>
    %32 = vector.shape_cast %31 : vector<8xf32> to vector<8x1xf32>
    %cst_22 = arith.constant 3.200000e+01 : f32
    %33 = vector.broadcast %cst_22 : f32 to vector<8x1xf32>
    %34 = arith.divf %32, %33 : vector<8x1xf32>
    %cst_23 = arith.constant 9.99999974E-6 : f32
    %35 = vector.broadcast %cst_23 : f32 to vector<8x1xf32>
    %36 = arith.addf %34, %35 : vector<8x1xf32>
    %37 = math.rsqrt %36 : vector<8x1xf32>
    %38 = vector.broadcast %37 : vector<8x1xf32> to vector<8x32xf32>
    %39 = arith.mulf %29, %38 : vector<8x32xf32>
    %40 = vector.broadcast %4 : vector<1x32xf32> to vector<8x32xf32>
    %41 = arith.mulf %39, %40 : vector<8x32xf32>
    %42 = vector.broadcast %5 : vector<1x32xf32> to vector<8x32xf32>
    %43 = arith.addf %41, %42 : vector<8x32xf32>
    %c0_24 = arith.constant 0 : index
    %c0_25 = arith.constant 0 : index
    %44 = vector.load %arg6[%c0_24, %c0_25] : memref<8x32xf32, #tpu.memory_space<vmem>>, vector<8x32xf32>
    tpu.vector_store %arg6[%c0_24, %c0_25], %43 {strides = array<i32>} : memref<8x32xf32, #tpu.memory_space<vmem>>, vector<8x32xf32>,
    return
  }
  func.func @transform_0(%arg0: i32) -> (i32, i32) {
    %c0_i32 = arith.constant 0 : i32
    %c0_i32_0 = arith.constant 0 : i32
    return %arg0, %c0_i32 : i32, i32
  }
  func.func @transform_1(%arg0: i32) -> (i32, i32) {
    %c0_i32 = arith.constant 0 : i32
    %c0_i32_0 = arith.constant 0 : i32
    %c0_i32_1 = arith.constant 0 : i32
    return %c0_i32, %c0_i32_0 : i32, i32
  }
  func.func @transform_2(%arg0: i32) -> (i32, i32) {
    %c0_i32 = arith.constant 0 : i32
    %c0_i32_0 = arith.constant 0 : i32
    %c0_i32_1 = arith.constant 0 : i32
    return %c0_i32, %c0_i32_0 : i32, i32
  }
  func.func @transform_3(%arg0: i32) -> (i32, i32) {
    %c0_i32 = arith.constant 0 : i32
    %c0_i32_0 = arith.constant 0 : i32
    %c0_i32_1 = arith.constant 0 : i32
    return %c0_i32, %c0_i32_0 : i32, i32
  }
  func.func @transform_4(%arg0: i32) -> (i32, i32) {
    %c0_i32 = arith.constant 0 : i32
    %c0_i32_0 = arith.constant 0 : i32
    %c0_i32_1 = arith.constant 0 : i32
    return %c0_i32, %c0_i32_0 : i32, i32
  }
  func.func @transform_5(%arg0: i32) -> (i32, i32) {
    %c0_i32 = arith.constant 0 : i32
    %c0_i32_0 = arith.constant 0 : i32
    return %arg0, %c0_i32 : i32, i32
  }
}

</mosaic_0001>

<bundles_post_ra>
// kernel: structure_module_transition.1
= control target key start
LH: loop header
LB: loop body
LE: loop exit
PB: predicated region body
PF: predicated region fallthrough
CT: control target
= control target key end

     0   :  { %10 = vsyncpa [#allocation3], 0  ;;  %s722_s0 = inlined_call_operand.vmem [shape: f32[16,32], index: 0, kind: input, shape index: {}]   ;;  %s723_s1 = inlined_call_operand.vmem [shape: f32[32,32], index: 1, kind: input, shape index: {}]   ;;  %s724_s2 = inlined_call_operand.vmem [shape: f32[32,32], index: 2, kind: input, shape index: {}]   ;;  %s725_s3 = inlined_call_operand.vmem [shape: f32[32,32], index: 3, kind: input, shape index: {}]   ;;  %s726_s4 = inlined_call_operand.vmem [shape: f32[8,32], index: 4, kind: input, shape index: {}]   ;;  %s727_s5 = inlined_call_operand.hbm [shape: f32[16,32], index: 5, kind: output, shape index: {}]  }
   0x1   :  { %12 = vsyncpa [#allocation3 + $0x1], 0  ;;  %s580_s18 = smov 0   ;;  %s582_s19 = smov 0  }
   0x2   :  { %s584_s20 = smov 0   ;;  %s586_s21 = smov 0  }
   0x3 LB: > { %s601_s22 = sadd.s32 4294967295, %s547_s21   ;;  %s423_s23 = sadd.s32 4294967294, %s547_s21   ;;  %s547_s21 = sphi %s586_s21, %s733_s21   ;;  %s543_s20 = sphi %s584_s20, %s732_s20   ;;  %s539_s19 = sphi %s582_s19, %s731_s19   ;;  %s535_s18 = sphi %s580_s18, %s730_s18  }
   0x4   : > { %s605_s24 = sadd.s32 1, %s547_s21   ;;  %s135_s25 = sadd.s32 1, %s543_s20 }
   0x5   : > { %s132_s26 = ssub.s32 %s547_s21, %s605_s24  ;;  %p145_p0 = scmp.ne.s32.totalorder %s543_s20, %s539_s19 }
   0x6   : > { %p133_p1 = scmp.eq.s32.totalorder %s132_s26, 0  ;;  %p146_p2 = scmp.eq.s32.totalorder %s601_s22, 1 }
   0x7   : > { %p151_p3 = scmp.ne.s32.totalorder %s539_s19, %s535_s18  ;;  %p152_p4 = scmp.eq.s32.totalorder %s423_s23, 1 }
   0x8   : > { %s616_s27 = scalar_select %p133_p1, %s543_s20, %s135_s25  }
   0x9   : > { %p618_p5 = por %p146_p2, %p145_p0  ;;  %p622_p6 = por %p152_p4, %p151_p3 }
   0xa   : > { %p426_p7 = scmp.ge.s32.totalorder %s547_s21, 1  ;;  %p189_p8 = scmp.lt.s32.totalorder %s547_s21, 3 }
   0xc   : > { %p190_p9 = pnand %p426_p7, %p189_p8 }
   0xd   : > { %p216_p10 = scmp.lt.s32.totalorder (!%p190_p9), %s601_s22, 1  ;;  %s213_s8 = sand.u32 (!%p190_p9), 1, %s539_s19  }
   0xe   : > { %193 = sbr.rel (%p190_p9) target bundleno = 694 (0x2b6), region = 40  ;;  %s427_s9 = sshll.u32 (!%p190_p9), %s213_s8, 3 }
   0xf   : > { %s433_s10 = sshll.u32 (!%p190_p9), %s601_s22, 3  ;;  %s215_s23 = scalar_lea.vmem (!%p190_p9), [#allocation2], %s427_s9 }
  0x10   : > { %s359_s15 = scalar_lea.hbm (!%p190_p9), %s727_s5, %s433_s10  ;;  %s349_s26 = scalar_lea.sflag (!%p190_p9), [#allocation3], %s213_s8 }
  0x11   : > { %s505_s9 = scalar_lea.hbm (!%p190_p9), %s727_s5, 16 }
  0x13   : > { %v229_v0 = vld [vmem:[%s723_s1 + $0x18] sm:$0xff]  ;;  %v228_v1 = vld [vmem:[%s723_s1 + $0x10] sm:$0xff]  ;;  %v227_v3 = vld [vmem:[%s723_s1 + $0x8] sm:$0xff]  ;;  %s217_s13 = scalar_select %p216_p10, %s601_s22, 1  ;;  %vm231_vm0 = vcmask 261120   ;;  %v549_v26 = vmov 32.0  }
  0x14   : > { %247 = vmatpush.msra.mxu0 %v229_v0  ;;  %v259_v2 = vld [vmem:[%s724_s2 + $0x18] sm:$0xff]  ;;  %v226_v4 = vld [vmem:[%s723_s1] sm:$0xff]  ;;  %v258_v6 = vld [vmem:[%s724_s2 + $0x10] sm:$0xff]  ;;  %481 = vrcp.f32 %v549_v26  ;;  %s361_s22 = sshll.u32 %s215_s23, 4  ;;  %s362_s22 = int_to_ptr.vmem [resolvable:$true] %s361_s22 }
  0x15   : > { %276 = vmatpush.msra.mxu1 %v259_v2  ;;  %s428_s16 = sshll.u32 %s217_s13, 3  ;;  %v257_v7 = vld [vmem:[%s724_s2 + $0x8] sm:$0xff]  ;;  %v256_v8 = vld [vmem:[%s724_s2] sm:$0xff]  ;;  %v288_v9 = vld [vmem:[%s725_s3 + $0x18] sm:$0xff] }
  0x16   : > { %248 = vmatpush.msra.mxu0 %v228_v1  ;;  %s219_s25 = scalar_lea.vmem %s722_s0, %s428_s16  ;;  %305 = vmatpush.msra.mxu2 %v288_v9  ;;  %v476_v10 = vld [vmem:[%s726_s4] ss:$0 sm:$0xff]  ;;  %v287_v14 = vld [vmem:[%s725_s3 + $0x10] sm:$0xff]  ;;  %v286_v15 = vld [vmem:[%s725_s3 + $0x8] sm:$0xff] }
  0x17   : > { %v220_v5 = vld [vmem:[%s219_s25] sm:$0xff]  ;;  %277 = vmatpush.msra.mxu1 %v258_v6  ;;  %s363_s25 = sshll.u32 %s359_s15, 4  ;;  %s364_s25 = int_to_ptr.hbm [resolvable:$true] %s363_s25 }
  0x18   : > { %249 = vmatpush.msra.mxu0 %v227_v3  ;;  %306 = vmatpush.msra.mxu2 %v287_v14  ;;  %v285_v16 = vld [vmem:[%s725_s3] sm:$0xff]  ;;  %s499_s30 = sshra.s32 %s364_s25, 4  ;;  %s500_s30 = int_to_ptr.hbm [resolvable:$true] %s499_s30 }
  0x19   : > { %278 = vmatpush.msra.mxu1 %v257_v7  ;;  %v477_v17 = vld [vmem:[%s726_s4 + $0x1] ss:$0 sm:$0xff]  ;;  %v478_v21 = vld [vmem:[%s726_s4 + $0x2] ss:$0 sm:$0xff]  ;;  %v479_v47 = vld [vmem:[%s726_s4 + $0x3] ss:$0 sm:$0xff]  ;;  %p506_p0 = scmp.lt.s32.totalorder %s500_s30, %s727_s5 }
  0x1a   : > { %250 = vmatpush.msra.mxu0 %v226_v4  ;;  %307 = vmatpush.msra.mxu2 %v286_v15  ;;  %v482_v27 = vpop.eup %481  ;;  %v480_v50 = vld [vmem:[%s726_s4 + $0x4] ss:$0 sm:$0xff]  ;;  %s501_s6 = scalar_lea.hbm %s500_s30, 8 }
  0x1b   : > { %429 = vmatmul.msk.f32.vlgmr.msra.gmra.mxu0 %vm231_vm0, %v220_v5  ;;  %279 = vmatpush.msra.mxu1 %v256_v8  ;;  %v318_v28 = vmul.f32 32.0, %v482_v27  ;;  %vm322_vm1 = vweird.f32 %v482_v27  ;;  %p502_p11 = scmp.ne.s32.totalorder %s500_s30, %s501_s6  ;;  %p507_p1 = scmp.lt.s32.totalorder %s505_s9, %s501_s6 }
  0x1c   : > { %308 = vmatpush.msra.mxu2 %v285_v16 }
  0x1d   : > { %v319_v29 = vsub.f32 1.0, %v318_v28  ;;  %p503_p12 = pnand %p502_p11, %p618_p5  ;;  %p508_p2 = por %p507_p1, %p506_p0 }
  0x1f   : > { %v320_v30 = vmul.f32 %v482_v27, %v319_v29  ;;  %p504_p13 = pneg %p503_p12 }
  0x21   : > { %v321_v31 = vadd.f32 %v482_v27, %v320_v30  ;;  %p509_p3 = pnand %p508_p2, %p504_p13 }
  0x23   : > { %v323_v32 = vsel %vm322_vm1, %v482_v27, %v321_v31 }
  0x98   : > { %v252_v11 = vpop.f32.mrf.mxu0 }
  0x99   : > { %v253_v12 = vadd.f32 %v476_v10, %v252_v11 }
  0x9b   : > { %v255_v13 = vmax.f32 %v253_v12, 0.0 }
  0x9d   : > { %430 = vmatmul.msk.f32.vlgmr.msra.gmra.mxu1 %vm231_vm0, %v255_v13 }
 0x11a   : > { %v281_v18 = vpop.f32.mrf.mxu1 }
 0x11b   : > { %v282_v19 = vadd.f32 %v477_v17, %v281_v18 }
 0x11d   : > { %v284_v20 = vmax.f32 %v282_v19, 0.0 }
 0x11f   : > { %431 = vmatmul.msk.f32.vlgmr.msra.gmra.mxu2 %vm231_vm0, %v284_v20 }
 0x1a2   : > { %v310_v22 = vpop.f32.mrf.mxu2 }
 0x1a3   : > { %v311_v23 = vadd.f32 %v478_v21, %v310_v22 }
 0x1a5   : > { %v313_v24 = vadd.f32 %v311_v23, %v220_v5 }
 0x1a7   : > { %v314_v25 = vsel %vm231_vm0, %v313_v24, 0.0 }
 0x1a8   : > { %315 = vadd.xlane.f32.xlu0 %v314_v25 }
 0x21b   : > { %v316_v33 = vpop.xlane.xlu0 %315 }
 0x21c   : > { %v324_v34 = vmul.f32 %v323_v32, %v316_v33 }
 0x21e   : > { %v325_v35 = vsub.f32 %v313_v24, %v324_v34 }
 0x220   : > { %v326_v36 = vmul.f32 %v325_v35, %v325_v35 }
 0x222   : > { %v327_v37 = vsel %vm231_vm0, %v326_v36, 0.0 }
 0x223   : > { %328 = vadd.xlane.f32.xlu0 %v327_v37 }
 0x296   : > { %v329_v38 = vpop.xlane.xlu0 %328 }
 0x297   : > { %v330_v39 = vmul.f32 %v329_v38, %v323_v32 }
 0x299   : > { %v331_v40 = vadd.f32 1e-05, %v330_v39 }
 0x29b   : > { %483 = vrsqrt.f32 %v331_v40  ;;  %vm338_vm3 = vweird.f32 %v331_v40 }
 0x2a1   : > { %v484_v41 = vpop.eup %483 }
 0x2a2   : > { %v333_v42 = vmul.f32 %v484_v41, %v331_v40  ;;  %vm339_vm2 = vweird.f32 %v484_v41 }
 0x2a3   : > { %vm340_vm4 = vmor %vm338_vm3, %vm339_vm2 }
 0x2a4   : > { %v334_v43 = vmul.f32 %v484_v41, %v333_v42 }
 0x2a6   : > { %v335_v44 = vmul.f32 0.5, %v334_v43 }
 0x2a8   : > { %v336_v45 = vsub.f32 1.5, %v335_v44 }
 0x2aa   : > { %v337_v46 = vmul.f32 %v484_v41, %v336_v45 }
 0x2ac   : > { %v341_v48 = vsel %vm340_vm4, %v484_v41, %v337_v46 }
 0x2ad   : > { %v342_v49 = vmul.f32 %v341_v48, %v325_v35 }
 0x2af   : > { %v344_v51 = vmul.f32 %v479_v47, %v342_v49 }
 0x2b1   : > { %v346_v52 = vadd.f32 %v480_v50, %v344_v51 }
 0x2b3   : > { %347 = vst.msk [vmem:[%s215_s23] sm:$0xff] %vm231_vm0, %v346_v52 }
 0x2b4   : > { %512 = shalt.err (!%p509_p3)
}
 0x2b5   : > { %436 = dma.vmem_to_hbm [thread:$0]  (%p618_p5), %s362_s22, 128, %s364_s25, %s349_s26  }
 0x2b6 PF: > { %p442_p4 = scmp.ge.s32.totalorder %s547_s21, 2  ;;  %s375_s8 = sand.u32 1, %s535_s18  }
 0x2b7   : > { %s376_s13 = scalar_lea.sflag [#allocation3], %s375_s8 }
 0x2b8   : > { %p439_p7 = pnand %p442_p4, %p622_p6 }
 0x2ba   : > { %p440_p8 = pneg %p439_p7 }
 0x2bc   : > { %530 = dma.done.wait (%p440_p8), %s376_s13, 128  }
 0x2bd   : > { %532 = vsyncadd (%p440_p8), %s376_s13, 4294967168  ;;  %p15_p9 = scmp.ge.s32.totalorder %s605_s24, 4   ;;  %s730_s18 = smov %s539_s19 }
 0x2be   : > { %s731_s19 = smov %s543_s20  ;;  %s732_s20 = smov %s616_s27 }
 0x2bf   : > { %s733_s21 = smov %s605_s24  ;;  %17 = sbr.rel (!%p15_p9) target bundleno = 3 (0x3), region = 75 }
 0x2c4   :  { %382 = vsyncpa [#allocation3], 1 }
 0x2c5   :  { %384 = vsyncpa [#allocation3 + $0x1], 1 }

</bundles_post_ra>
